<compile_context>
chip_gen: v5e
topology: v5e:2x2
jax: 0.10.0
libtpu: 0.0.40
codegen_flags: <defaults>
</compile_context>

<pallas_src>
import jax
import jax.numpy as jnp
from jax.experimental import pallas as pl
from jax.experimental.pallas import tpu as pltpu


def _round_up(x, m):
    return ((x + m - 1) // m) * m


def _multi_embedding_kernel(idx_ref, w_ref, o_ref):
    # idx_ref : (tile_n, L) int32   token ids per level, -1 sentinel for padding
    # w_ref   : (L, K_pad, D_pad)   full embedding table, VMEM-resident
    # o_ref   : (tile_n, D_pad)     output tile
    tile_n, n_levels = idx_ref.shape
    _, n_tokens, token_dim = w_ref.shape

    one = jnp.ones((), w_ref.dtype)
    zero = jnp.zeros((), w_ref.dtype)
    k_iota = jax.lax.broadcasted_iota(jnp.int32, (tile_n, n_tokens), 1)

    acc = jnp.zeros((tile_n, token_dim), jnp.float32)
    # L is small and static -> unrolled Python loop (visible to the scheduler).
    for l in range(n_levels):
        idx_l = idx_ref[:, l:l + 1]                       # (tile_n, 1) static slice
        # Sentinel -1 (and any padded row) never matches k_iota >= 0 -> zero row.
        onehot = jnp.where(k_iota == idx_l, one, zero)    # (tile_n, K_pad) in w dtype
        acc = acc + jnp.dot(onehot, w_ref[l],
                            preferred_element_type=jnp.float32)
    o_ref[...] = acc.astype(o_ref.dtype)


def multi_embedding_forward(x_list, weight, *, tile_n=1024):
    """x_list: list of (n_i, l_i) int arrays; weight: (max_n_levels, n_tokens, token_dim)."""
    if len(x_list) == 0:
        return []
    max_n_levels, n_tokens, token_dim = weight.shape
    lengths = [int(xi.shape[0]) for xi in x_list]

    # ---- glue: pad levels with a -1 sentinel and concatenate all sequences ----
    idx_parts = []
    for xi in x_list:
        n_i, l_i = xi.shape
        xi = xi.astype(jnp.int32)
        idx_parts.append(
            jnp.pad(xi, ((0, 0), (0, max_n_levels - l_i)), constant_values=-1))
    idx = jnp.concatenate(idx_parts, axis=0)
    n_total = idx.shape[0]

    # ---- pad vocab / dim to MXU- and lane-friendly sizes ----
    k_pad = _round_up(n_tokens, 128)
    d_pad = _round_up(token_dim, 128)
    w = weight
    if (k_pad, d_pad) != (n_tokens, token_dim):
        w = jnp.pad(w, ((0, 0), (0, k_pad - n_tokens), (0, d_pad - token_dim)))

    # ---- tile / pad the row axis (multiple of 8 for sublane alignment) ----
    tn = min(_round_up(tile_n, 8), _round_up(n_total, 8))
    n_pad = _round_up(n_total, tn)
    if n_pad != n_total:
        idx = jnp.pad(idx, ((0, n_pad - n_total), (0, 0)), constant_values=-1)

    # ---- VMEM budget: resident table + double-buffered idx / out tiles ----
    itemsize = jnp.dtype(w.dtype).itemsize
    w_bytes = max_n_levels * k_pad * d_pad * itemsize
    idx_bytes = tn * max_n_levels * 4
    out_bytes = tn * d_pad * itemsize
    needed = 2 * w_bytes + 2 * idx_bytes + 2 * out_bytes + (8 << 20)
    try:
        phys_vmem = int(pltpu.get_tpu_info().vmem_capacity_bytes)
    except Exception:
        phys_vmem = 64 << 20  # conservative (v7x per-TC VMEM)
    vmem_limit = max(32 << 20, min(needed, (phys_vmem * 7) // 8))

    out = pl.pallas_call(
        _multi_embedding_kernel,
        out_shape=jax.ShapeDtypeStruct((n_pad, d_pad), w.dtype),
        grid_spec=pltpu.PrefetchScalarGridSpec(
            num_scalar_prefetch=0,
            grid=(n_pad // tn,),
            in_specs=[
                pl.BlockSpec((tn, max_n_levels), lambda n: (n, 0)),        # idx tile
                pl.BlockSpec((max_n_levels, k_pad, d_pad),
                             lambda n: (0, 0, 0)),                          # resident table
            ],
            out_specs=pl.BlockSpec((tn, d_pad), lambda n: (n, 0)),
        ),
        compiler_params=pltpu.CompilerParams(
            dimension_semantics=("parallel",),
            vmem_limit_bytes=int(vmem_limit),
        ),
    )(idx, w)

    out = out[:n_total, :token_dim]
    outs, start = [], 0
    for n_i in lengths:
        outs.append(out[start:start + n_i])
        start += n_i
    return outs


def multi_embedding_reference(x_list, weight):
    """Pure-JAX reference reproducing the PyTorch forward (gather + sum)."""
    _, _, token_dim = weight.shape
    outs = []
    for xi in x_list:
        n_i, l_i = xi.shape
        acc = jnp.zeros((n_i, token_dim), weight.dtype)
        for l in range(l_i):
            acc = acc + weight[l][xi[:, l]]
        outs.append(acc)
    return outs


if __name__ == "__main__":
    key = jax.random.PRNGKey(0)
    max_n_levels, n_tokens, token_dim = 4, 16, 32

    kw, k1, k2 = jax.random.split(key, 3)
    weight = jax.random.normal(
        kw, (max_n_levels, n_tokens, token_dim), dtype=jnp.float32)
    x_list = [
        jax.random.randint(k1, (5, 3), 0, n_tokens, dtype=jnp.int32),
        jax.random.randint(k2, (7, 4), 0, n_tokens, dtype=jnp.int32),
    ]

    outs = multi_embedding_forward(x_list, weight)
    outs = jax.block_until_ready(outs)

    refs = multi_embedding_reference(x_list, weight)
    assert len(outs) == len(refs)
    for o, r, xi in zip(outs, refs, x_list):
        assert o.shape == (xi.shape[0], token_dim)
        assert jnp.allclose(o, r, atol=1e-4, rtol=1e-4), "mismatch vs reference"

    print("KERNEL_OK")
</pallas_src>

<mosaic_0001>
module attributes {stable_mosaic.version = 11 : i64} {
  func.func @_multi_embedding_kernel(%arg0: i32, %arg1: memref<16x4xi32, #tpu.memory_space<vmem>>, %arg2: memref<4x128x128xf32, #tpu.memory_space<vmem>>, %arg3: memref<16x128xf32, #tpu.memory_space<vmem>>) attributes {dimension_semantics = [#tpu.dimension_semantics<parallel>], iteration_bounds = array<i64: 1>, scalar_prefetch = 0 : i64, scratch_operands = 0 : i64, tpu.core_type = #tpu.core_type<tc>, window_params = [{transform_indices = @transform_0, window_bounds = array<i64: 16, 4>}, {pipeline_mode = #tpu.pipeline_mode<synchronous>, transform_indices = @transform_1, window_bounds = array<i64: 4, 128, 128>}, {transform_indices = @transform_2, window_bounds = array<i64: 16, 128>}]} {
    %0 = tpu.iota {dimensions = array<i32: 1>} : vector<16x128xi32>
    %cst = arith.constant 0.000000e+00 : f32
    %1 = vector.broadcast %cst : f32 to vector<16x128xf32>
    %c0 = arith.constant 0 : index
    %c0_0 = arith.constant 0 : index
    %2 = vector.load %arg1[%c0, %c0_0] : memref<16x4xi32, #tpu.memory_space<vmem>>, vector<16x1xi32>
    %3 = vector.broadcast %2 : vector<16x1xi32> to vector<16x128xi32>
    %4 = arith.cmpi eq, %0, %3 : vector<16x128xi32>
    %cst_1 = arith.constant 1.000000e+00 : f32
    %cst_2 = arith.constant 0.000000e+00 : f32
    %5 = vector.broadcast %cst_1 : f32 to vector<16x128xf32>
    %6 = vector.broadcast %cst_2 : f32 to vector<16x128xf32>
    %7 = arith.select %4, %5, %6 : vector<16x128xi1>, vector<16x128xf32>
    %c0_3 = arith.constant 0 : index
    %c0_4 = arith.constant 0 : index
    %c0_5 = arith.constant 0 : index
    %8 = vector.load %arg2[%c0_3, %c0_4, %c0_5] : memref<4x128x128xf32, #tpu.memory_space<vmem>>, vector<1x128x128xf32>
    %9 = vector.shape_cast %8 : vector<1x128x128xf32> to vector<128x128xf32>
    %cst_6 = arith.constant dense<0.000000e+00> : vector<16x128xf32>
    %10 = tpu.matmul %7, %9, %cst_6 {dimension_numbers = #tpu.dot_dimension_numbers<[1], [0], [0], [1], [0, 0, 1, 1], [], []>} : vector<16x128xf32>, vector<128x128xf32>, vector<16x128xf32> -> vector<16x128xf32>
    %11 = arith.addf %1, %10 : vector<16x128xf32>
    %c0_7 = arith.constant 0 : index
    %c1 = arith.constant 1 : index
    %12 = vector.load %arg1[%c0_7, %c1] : memref<16x4xi32, #tpu.memory_space<vmem>>, vector<16x1xi32>
    %13 = vector.broadcast %12 : vector<16x1xi32> to vector<16x128xi32>
    %14 = arith.cmpi eq, %0, %13 : vector<16x128xi32>
    %cst_8 = arith.constant 1.000000e+00 : f32
    %cst_9 = arith.constant 0.000000e+00 : f32
    %15 = vector.broadcast %cst_8 : f32 to vector<16x128xf32>
    %16 = vector.broadcast %cst_9 : f32 to vector<16x128xf32>
    %17 = arith.select %14, %15, %16 : vector<16x128xi1>, vector<16x128xf32>
    %c1_10 = arith.constant 1 : index
    %c0_11 = arith.constant 0 : index
    %c0_12 = arith.constant 0 : index
    %18 = vector.load %arg2[%c1_10, %c0_11, %c0_12] : memref<4x128x128xf32, #tpu.memory_space<vmem>>, vector<1x128x128xf32>
    %19 = vector.shape_cast %18 : vector<1x128x128xf32> to vector<128x128xf32>
    %cst_13 = arith.constant dense<0.000000e+00> : vector<16x128xf32>
    %20 = tpu.matmul %17, %19, %cst_13 {dimension_numbers = #tpu.dot_dimension_numbers<[1], [0], [0], [1], [0, 0, 1, 1], [], []>} : vector<16x128xf32>, vector<128x128xf32>, vector<16x128xf32> -> vector<16x128xf32>
    %21 = arith.addf %11, %20 : vector<16x128xf32>
    %c0_14 = arith.constant 0 : index
    %c2 = arith.constant 2 : index
    %22 = vector.load %arg1[%c0_14, %c2] : memref<16x4xi32, #tpu.memory_space<vmem>>, vector<16x1xi32>
    %23 = vector.broadcast %22 : vector<16x1xi32> to vector<16x128xi32>
    %24 = arith.cmpi eq, %0, %23 : vector<16x128xi32>
    %cst_15 = arith.constant 1.000000e+00 : f32
    %cst_16 = arith.constant 0.000000e+00 : f32
    %25 = vector.broadcast %cst_15 : f32 to vector<16x128xf32>
    %26 = vector.broadcast %cst_16 : f32 to vector<16x128xf32>
    %27 = arith.select %24, %25, %26 : vector<16x128xi1>, vector<16x128xf32>
    %c2_17 = arith.constant 2 : index
    %c0_18 = arith.constant 0 : index
    %c0_19 = arith.constant 0 : index
    %28 = vector.load %arg2[%c2_17, %c0_18, %c0_19] : memref<4x128x128xf32, #tpu.memory_space<vmem>>, vector<1x128x128xf32>
    %29 = vector.shape_cast %28 : vector<1x128x128xf32> to vector<128x128xf32>
    %cst_20 = arith.constant dense<0.000000e+00> : vector<16x128xf32>
    %30 = tpu.matmul %27, %29, %cst_20 {dimension_numbers = #tpu.dot_dimension_numbers<[1], [0], [0], [1], [0, 0, 1, 1], [], []>} : vector<16x128xf32>, vector<128x128xf32>, vector<16x128xf32> -> vector<16x128xf32>
    %31 = arith.addf %21, %30 : vector<16x128xf32>
    %c0_21 = arith.constant 0 : index
    %c3 = arith.constant 3 : index
    %32 = vector.load %arg1[%c0_21, %c3] : memref<16x4xi32, #tpu.memory_space<vmem>>, vector<16x1xi32>
    %33 = vector.broadcast %32 : vector<16x1xi32> to vector<16x128xi32>
    %34 = arith.cmpi eq, %0, %33 : vector<16x128xi32>
    %cst_22 = arith.constant 1.000000e+00 : f32
    %cst_23 = arith.constant 0.000000e+00 : f32
    %35 = vector.broadcast %cst_22 : f32 to vector<16x128xf32>
    %36 = vector.broadcast %cst_23 : f32 to vector<16x128xf32>
    %37 = arith.select %34, %35, %36 : vector<16x128xi1>, vector<16x128xf32>
    %c3_24 = arith.constant 3 : index
    %c0_25 = arith.constant 0 : index
    %c0_26 = arith.constant 0 : index
    %38 = vector.load %arg2[%c3_24, %c0_25, %c0_26] : memref<4x128x128xf32, #tpu.memory_space<vmem>>, vector<1x128x128xf32>
    %39 = vector.shape_cast %38 : vector<1x128x128xf32> to vector<128x128xf32>
    %cst_27 = arith.constant dense<0.000000e+00> : vector<16x128xf32>
    %40 = tpu.matmul %37, %39, %cst_27 {dimension_numbers = #tpu.dot_dimension_numbers<[1], [0], [0], [1], [0, 0, 1, 1], [], []>} : vector<16x128xf32>, vector<128x128xf32>, vector<16x128xf32> -> vector<16x128xf32>
    %41 = arith.addf %31, %40 : vector<16x128xf32>
    %c0_28 = arith.constant 0 : index
    %c0_29 = arith.constant 0 : index
    %42 = vector.load %arg3[%c0_28, %c0_29] : memref<16x128xf32, #tpu.memory_space<vmem>>, vector<16x128xf32>
    tpu.vector_store %arg3[%c0_28, %c0_29], %41 {strides = array<i32>} : memref<16x128xf32, #tpu.memory_space<vmem>>, vector<16x128xf32>,
    return
  }
  func.func @transform_0(%arg0: i32) -> (i32, i32) {
    %c0_i32 = arith.constant 0 : i32
    %c0_i32_0 = arith.constant 0 : i32
    return %arg0, %c0_i32 : i32, i32
  }
  func.func @transform_1(%arg0: i32) -> (i32, i32, i32) {
    %c0_i32 = arith.constant 0 : i32
    %c0_i32_0 = arith.constant 0 : i32
    %c0_i32_1 = arith.constant 0 : i32
    %c0_i32_2 = arith.constant 0 : i32
    return %c0_i32, %c0_i32_0, %c0_i32_1 : i32, i32, i32
  }
  func.func @transform_2(%arg0: i32) -> (i32, i32) {
    %c0_i32 = arith.constant 0 : i32
    %c0_i32_0 = arith.constant 0 : i32
    return %arg0, %c0_i32 : i32, i32
  }
}

</mosaic_0001>

<bundles_post_ra>
// kernel: tpu_custom_call.1
= control target key start
LH: loop header
LB: loop body
LE: loop exit
PB: predicated region body
PF: predicated region fallthrough
CT: control target
= control target key end

     0   :  { %7 = vsyncpa [#allocation3], 0  ;;  %s383_s0 = inlined_call_operand.vmem [shape: s32[16,4], index: 0, kind: input, shape index: {}]   ;;  %s384_s1 = inlined_call_operand.hbm [shape: f32[4,128,128], index: 1, kind: input, shape index: {}]   ;;  %s385_s2 = inlined_call_operand.hbm [shape: f32[16,128], index: 2, kind: output, shape index: {}]  }
   0x1   :  { %8 = vsyncpa [#allocation4], 0  ;;  %s15_s11 = sshll.u32 %s384_s1, 4  ;;  %s333_s12 = smov [#allocation2]   ;;  %s16_s11 = int_to_ptr.hbm [resolvable:$true] %s15_s11 }
   0x2   :  { %s17_s13 = sshll.u32 %s333_s12, 4  ;;  %s334_s14 = smov 128   ;;  %s18_s13 = int_to_ptr.vmem [resolvable:$true] %s17_s13 }
   0x3   :  { %s335_s15 = smov 8  }
   0x4   :  { %23 = dma.hbm_to_vmem [thread:$0]  %s16_s11, 8192, %s18_s13, [#allocation3], %s334_s14, %s334_s14, %s335_s15  }
   0x5   :  { %329 = dma.done.wait [#allocation3], 8192  }
   0x6   :  { %330 = vsyncadd [#allocation3], 4294959104  ;;  %v336_v0 = vmov 2   ;;  %v337_v1 = vmov 0   ;;  %v30_v2 = vld [vmem:[%s383_s0] sm:$0xff]  ;;  %v157_v3 = vld [vmem:[#allocation2 + $0x178] sm:$0xff] }
   0x7   :  { %273 = vset.pattern.permute.xlu0 %v336_v0  ;;  %275 = vset.pattern.permute.xlu1 %v337_v1  ;;  %v370_v4 = vld [vmem:[%s383_s0 + $0x8] sm:$0xff]  ;;  %v57_v5 = vld [vmem:[#allocation2 + $0x78] sm:$0xff]  ;;  %v156_v6 = vld [vmem:[#allocation2 + $0x170] sm:$0xff]  ;;  %v338_v17 = vmov 1   ;;  %v339_v18 = vmov 3   ;;  %s341_s0 = smov [#allocation5]  }
   0x8   :  { %277 = vset.pattern.permute.xlu2 %v336_v0  ;;  %33 = vperm.xlu1 %275, %v30_v2   ;;  %v56_v7 = vld [vmem:[#allocation2 + $0x70] sm:$0xff]  ;;  %v155_v8 = vld [vmem:[#allocation2 + $0x168] sm:$0xff]  ;;  %v84_v9 = vld [vmem:[#allocation2 + $0xf8] sm:$0xff]  ;;  %s241_s19 = sshll.u32 %s341_s0, 4  ;;  %s243_s22 = sshll.u32 %s385_s2, 4  ;;  %s242_s19 = int_to_ptr.vmem [resolvable:$true] %s241_s19  ;;  %s244_s22 = int_to_ptr.hbm [resolvable:$true] %s243_s22 }
   0x9   :  { %132 = vperm.xlu0 %273, %v30_v2   ;;  %135 = vperm.xlu2 %277, %v370_v4   ;;  %v55_v10 = vld [vmem:[#allocation2 + $0x68] sm:$0xff]  ;;  %v209_v11 = vld [vmem:[#allocation2 + $0x1f8] sm:$0xff]  ;;  %v154_v12 = vld [vmem:[#allocation2 + $0x160] sm:$0xff] }
   0xa   :  { %158 = vmatpush.msra.mxu2 %v157_v3  ;;  %108 = vmatpush.msra.mxu1 %v57_v5  ;;  %v83_v13 = vld [vmem:[#allocation2 + $0xf0] sm:$0xff]  ;;  %v82_v15 = vld [vmem:[#allocation2 + $0xe8] sm:$0xff]  ;;  %v54_v16 = vld [vmem:[#allocation2 + $0x60] sm:$0xff] }
   0xb   :  { %85 = vmatpush.msra.mxu0 %v84_v9  ;;  %210 = vmatpush.msra.mxu3 %v209_v11  ;;  %v208_v14 = vld [vmem:[#allocation2 + $0x1f0] sm:$0xff]  ;;  %v153_v19 = vld [vmem:[#allocation2 + $0x158] sm:$0xff]  ;;  %v207_v21 = vld [vmem:[#allocation2 + $0x1e8] sm:$0xff]  ;;  %v340_v11 = vmov 1.0  }
   0xc   :  { %159 = vmatpush.msra.mxu2 %v156_v6  ;;  %109 = vmatpush.msra.mxu1 %v56_v7  ;;  %v53_v20 = vld [vmem:[#allocation2 + $0x58] sm:$0xff]  ;;  %v152_v22 = vld [vmem:[#allocation2 + $0x150] sm:$0xff]  ;;  %v81_v23 = vld [vmem:[#allocation2 + $0xe0] sm:$0xff]  ;;  %v28_v6 = vlaneseq }
   0xd   :  { %86 = vmatpush.msra.mxu0 %v83_v13  ;;  %211 = vmatpush.msra.mxu3 %v208_v14  ;;  %v52_v24 = vld [vmem:[#allocation2 + $0x50] sm:$0xff]  ;;  %v206_v25 = vld [vmem:[#allocation2 + $0x1e0] sm:$0xff]  ;;  %v151_v26 = vld [vmem:[#allocation2 + $0x148] sm:$0xff] }
   0xe   :  { %160 = vmatpush.msra.mxu2 %v155_v8  ;;  %110 = vmatpush.msra.mxu1 %v55_v10  ;;  %v80_v27 = vld [vmem:[#allocation2 + $0xd8] sm:$0xff]  ;;  %v51_v28 = vld [vmem:[#allocation2 + $0x48] sm:$0xff]  ;;  %v150_v30 = vld [vmem:[#allocation2 + $0x140] sm:$0xff]  ;;  %v29_v8 = vand.u32 127, %v28_v6 }
   0xf   :  { %87 = vmatpush.msra.mxu0 %v82_v15  ;;  %212 = vmatpush.msra.mxu3 %v207_v21  ;;  %v205_v29 = vld [vmem:[#allocation2 + $0x1d8] sm:$0xff]  ;;  %v50_v31 = vld [vmem:[#allocation2 + $0x40] sm:$0xff]  ;;  %v148_v34 = vld [vmem:[#allocation2 + $0x130] sm:$0xff] }
  0x10   :  { %161 = vmatpush.msra.mxu2 %v154_v12  ;;  %276 = vset.pattern.permute.xlu1 %v338_v17  ;;  %v149_v32 = vld [vmem:[#allocation2 + $0x138] sm:$0xff]  ;;  %v79_v35 = vld [vmem:[#allocation2 + $0xd0] sm:$0xff]  ;;  %v147_v38 = vld [vmem:[#allocation2 + $0x128] sm:$0xff] }
  0x11   :  { %274 = vset.pattern.permute.xlu0 %v339_v18  ;;  %59 = vperm.xlu1 %276, %v30_v2   ;;  %v49_v33 = vld [vmem:[#allocation2 + $0x38] sm:$0xff]  ;;  %v48_v36 = vld [vmem:[#allocation2 + $0x30] sm:$0xff]  ;;  %v78_v39 = vld [vmem:[#allocation2 + $0xc8] sm:$0xff] }
  0x12   :  { %184 = vperm.xlu0 %274, %v30_v2   ;;  %278 = vset.pattern.permute.xlu2 %v339_v18  ;;  %v204_v37 = vld [vmem:[#allocation2 + $0x1d0] sm:$0xff]  ;;  %v47_v40 = vld [vmem:[#allocation2 + $0x28] sm:$0xff]  ;;  %v146_v42 = vld [vmem:[#allocation2 + $0x120] sm:$0xff] }
  0x13   :  { %111 = vmatpush.msra.mxu1 %v54_v16  ;;  %187 = vperm.xlu2 %278, %v370_v4   ;;  %v203_v41 = vld [vmem:[#allocation2 + $0x1c8] sm:$0xff]  ;;  %v77_v43 = vld [vmem:[#allocation2 + $0xc0] sm:$0xff]  ;;  %v145_v46 = vld [vmem:[#allocation2 + $0x118] sm:$0xff] }
  0x14   :  { %162 = vmatpush.msra.mxu2 %v153_v19  ;;  %88 = vmatpush.msra.mxu0 %v81_v23  ;;  %v46_v44 = vld [vmem:[#allocation2 + $0x20] sm:$0xff]  ;;  %v76_v47 = vld [vmem:[#allocation2 + $0xb8] sm:$0xff]  ;;  %v144_v50 = vld [vmem:[#allocation2 + $0x110] sm:$0xff] }
  0x15   :  { %112 = vmatpush.msra.mxu1 %v53_v20  ;;  %213 = vmatpush.msra.mxu3 %v206_v25  ;;  %v202_v45 = vld [vmem:[#allocation2 + $0x1c0] sm:$0xff]  ;;  %v45_v48 = vld [vmem:[#allocation2 + $0x18] sm:$0xff]  ;;  %v75_v51 = vld [vmem:[#allocation2 + $0xb0] sm:$0xff] }
  0x16   :  { %163 = vmatpush.msra.mxu2 %v152_v22  ;;  %89 = vmatpush.msra.mxu0 %v80_v27  ;;  %v201_v49 = vld [vmem:[#allocation2 + $0x1b8] sm:$0xff]  ;;  %v44_v52 = vld [vmem:[#allocation2 + $0x10] sm:$0xff]  ;;  %v143_v54 = vld [vmem:[#allocation2 + $0x108] sm:$0xff] }
  0x17   :  { %113 = vmatpush.msra.mxu1 %v52_v24  ;;  %214 = vmatpush.msra.mxu3 %v205_v29  ;;  %v200_v53 = vld [vmem:[#allocation2 + $0x1b0] sm:$0xff]  ;;  %v74_v55 = vld [vmem:[#allocation2 + $0xa8] sm:$0xff]  ;;  %v142_v58 = vld [vmem:[#allocation2 + $0x100] sm:$0xff] }
  0x18   :  { %164 = vmatpush.msra.mxu2 %v151_v26  ;;  %90 = vmatpush.msra.mxu0 %v79_v35  ;;  %v43_v56 = vld [vmem:[#allocation2 + $0x8] sm:$0xff]  ;;  %v73_v59 = vld [vmem:[#allocation2 + $0xa0] sm:$0xff]  ;;  %v72_v62 = vld [vmem:[#allocation2 + $0x98] sm:$0xff] }
  0x19   :  { %114 = vmatpush.msra.mxu1 %v51_v28  ;;  %279 = vset.pattern.permute.xlu1 %v337_v1  ;;  %v199_v57 = vld [vmem:[#allocation2 + $0x1a8] sm:$0xff]  ;;  %v42_v60 = vld [vmem:[#allocation2] sm:$0xff]  ;;  %v197_v63 = vld [vmem:[#allocation2 + $0x198] sm:$0xff] }
  0x1a   :  { %165 = vmatpush.msra.mxu2 %v150_v30  ;;  %36 = vperm.xlu1 %279, %v370_v4   ;;  %v198_v61 = vld [vmem:[#allocation2 + $0x1a0] sm:$0xff]  ;;  %v71_v0 = vld [vmem:[#allocation2 + $0x90] sm:$0xff]  ;;  %v70_v2 = vld [vmem:[#allocation2 + $0x88] sm:$0xff] }
  0x1b   :  { %115 = vmatpush.msra.mxu1 %v50_v31  ;;  %280 = vset.pattern.permute.xlu2 %v338_v17  ;;  %v196_v1 = vld [vmem:[#allocation2 + $0x190] sm:$0xff]  ;;  %v195_v3 = vld [vmem:[#allocation2 + $0x188] sm:$0xff]  ;;  %v194_v5 = vld [vmem:[#allocation2 + $0x180] sm:$0xff] }
  0x1c   :  { %166 = vmatpush.msra.mxu2 %v149_v32  ;;  %62 = vperm.xlu2 %280, %v370_v4   ;;  %v69_v4 = vld [vmem:[#allocation2 + $0x80] sm:$0xff] }
  0x1d   :  { %116 = vmatpush.msra.mxu1 %v49_v33  ;;  %215 = vmatpush.msra.mxu3 %v204_v37 }
  0x1e   :  { %167 = vmatpush.msra.mxu2 %v148_v34  ;;  %91 = vmatpush.msra.mxu0 %v78_v39 }
  0x1f   :  { %117 = vmatpush.msra.mxu1 %v48_v36  ;;  %216 = vmatpush.msra.mxu3 %v203_v41 }
  0x20   :  { %168 = vmatpush.msra.mxu2 %v147_v38  ;;  %92 = vmatpush.msra.mxu0 %v77_v43 }
  0x21   :  { %118 = vmatpush.msra.mxu1 %v47_v40  ;;  %217 = vmatpush.msra.mxu3 %v202_v45 }
  0x22   :  { %169 = vmatpush.msra.mxu2 %v146_v42  ;;  %93 = vmatpush.msra.mxu0 %v76_v47 }
  0x23   :  { %119 = vmatpush.msra.mxu1 %v46_v44  ;;  %218 = vmatpush.msra.mxu3 %v201_v49 }
  0x24   :  { %170 = vmatpush.msra.mxu2 %v145_v46  ;;  %94 = vmatpush.msra.mxu0 %v75_v51 }
  0x25   :  { %120 = vmatpush.msra.mxu1 %v45_v48  ;;  %219 = vmatpush.msra.mxu3 %v200_v53 }
  0x26   :  { %171 = vmatpush.msra.mxu2 %v144_v50  ;;  %95 = vmatpush.msra.mxu0 %v74_v55 }
  0x27   :  { %121 = vmatpush.msra.mxu1 %v44_v52  ;;  %220 = vmatpush.msra.mxu3 %v199_v57 }
  0x28   :  { %172 = vmatpush.msra.mxu2 %v143_v54  ;;  %96 = vmatpush.msra.mxu0 %v73_v59 }
  0x29   :  { %122 = vmatpush.msra.mxu1 %v43_v56  ;;  %221 = vmatpush.msra.mxu3 %v198_v61 }
  0x2a   :  { %173 = vmatpush.msra.mxu2 %v142_v58  ;;  %97 = vmatpush.msra.mxu0 %v72_v62 }
  0x2b   :  { %123 = vmatpush.msra.mxu1 %v42_v60  ;;  %222 = vmatpush.msra.mxu3 %v197_v63 }
  0x2c   :  { %98 = vmatpush.msra.mxu0 %v71_v0 }
  0x2d   :  { %223 = vmatpush.msra.mxu3 %v196_v1 }
  0x2e   :  { %99 = vmatpush.msra.mxu0 %v70_v2 }
  0x2f   :  { %224 = vmatpush.msra.mxu3 %v195_v3 }
  0x30   :  { %100 = vmatpush.msra.mxu0 %v69_v4 }
  0x31   :  { %225 = vmatpush.msra.mxu3 %v194_v5 }
  0x63   :  { %v136_v7 = vpop.permute.xlu2 %135 }
  0x64   :  { %vm138_vm2 = vcmp.eq.s32.totalorder %v29_v8, %v136_v7 }
  0x6d   :  { %v188_v12 = vpop.permute.xlu2 %187 }
  0x6e   :  { %vm190_vm6 = vcmp.eq.s32.totalorder %v29_v8, %v188_v12 }
  0x76   :  { %v63_v15 = vpop.permute.xlu2 %62 }
  0x77   :  { %vm65_vm5 = vcmp.eq.s32.totalorder %v29_v8, %v63_v15 }
  0x7a   :  { %v34_v10 = vpop.permute.xlu1 %33 }
  0x7b   :  { %v133_v9 = vpop.permute.xlu0 %132  ;;  %vm38_vm1 = vcmp.eq.s32.totalorder %v29_v8, %v34_v10 }
  0x7c   :  { %vm137_vm0 = vcmp.eq.s32.totalorder %v29_v8, %v133_v9  ;;  %258 = vmatmul.msk.f32.vlgmr.msra.gmra.mxu1 %vm38_vm1, %v340_v11 }
  0x7d   :  { %260 = vmatmul.msk.f32.vlgmr.msra.gmra.mxu2 %vm137_vm0, %v340_v11 }
  0x83   :  { %v60_v13 = vpop.permute.xlu1 %59 }
  0x84   :  { %v185_v14 = vpop.permute.xlu0 %184  ;;  %vm64_vm3 = vcmp.eq.s32.totalorder %v29_v8, %v60_v13 }
  0x85   :  { %vm189_vm4 = vcmp.eq.s32.totalorder %v29_v8, %v185_v14  ;;  %261 = vmatmul.msk.f32.gmra.mxu2 %vm138_vm2, %v340_v11  ;;  %256 = vmatmul.msk.f32.vlgmr.msra.gmra.mxu0 %vm64_vm3, %v340_v11 }
  0x86   :  { %262 = vmatmul.msk.f32.vlgmr.msra.gmra.mxu3 %vm189_vm4, %v340_v11 }
  0x8c   :  { %v37_v16 = vpop.permute.xlu1 %36 }
  0x8d   :  { %vm39_vm7 = vcmp.eq.s32.totalorder %v29_v8, %v37_v16  ;;  %257 = vmatmul.msk.f32.gmra.mxu0 %vm65_vm5, %v340_v11 }
  0x8e   :  { %263 = vmatmul.msk.f32.gmra.mxu3 %vm190_vm6, %v340_v11  ;;  %259 = vmatmul.msk.f32.gmra.mxu1 %vm39_vm7, %v340_v11 }
  0xf9   :  { %v125_v17 = vpop.f32.mrf.mxu1 }
 0x100   :  { %v175_v19 = vpop.f32.mrf.mxu2 }
 0x102   :  { %v102_v18 = vpop.f32.mrf.mxu0 }
 0x103   :  { %v126_v20 = vadd.f32 %v125_v17, %v102_v18 }
 0x105   :  { %v181_v21 = vadd.f32 %v175_v19, %v126_v20 }
 0x108   :  { %v178_v27 = vpop.f32.mrf.mxu2 }
 0x109   :  { %v227_v22 = vpop.f32.mrf.mxu3 }
 0x10a   :  { %v233_v23 = vadd.f32 %v227_v22, %v181_v21  ;;  %v105_v24 = vpop.f32.mrf.mxu0 }
 0x10b   :  { %v128_v25 = vpop.f32.mrf.mxu1 }
 0x10c   :  { %235 = vst [vmem:[#allocation5] sm:$0xff] %v233_v23  ;;  %v129_v26 = vadd.f32 %v128_v25, %v105_v24 }
 0x10e   :  { %v182_v28 = vadd.f32 %v178_v27, %v129_v26 }
 0x111   :  { %v230_v29 = vpop.f32.mrf.mxu3 }
 0x112   :  { %v234_v30 = vadd.f32 %v230_v29, %v182_v28 }
 0x114   :  { %236 = vst [vmem:[#allocation5 + $0x8] sm:$0xff] %v234_v30 }
 0x115   :  { %249 = dma.vmem_to_hbm [thread:$0]  %s242_s19, 256, %s244_s22, [#allocation4], %s334_s14, %s334_s14, %s335_s15  }
 0x116   :  { %331 = dma.done.wait [#allocation4], 256  }
 0x117   :  { %332 = vsyncadd [#allocation4], 4294967040 }
 0x118   :  { %254 = vsyncpa [#allocation3], 1 }
 0x119   :  { %255 = vsyncpa [#allocation4], 1 }

</bundles_post_ra>
